<compile_context>
chip_gen: v5e
topology: v5e:2x2
jax: 0.10.0
libtpu: 0.0.40
codegen_flags: <defaults>
</compile_context>

<pallas_src>
import functools

import jax
import jax.numpy as jnp
from jax import lax
from jax.experimental import pallas as pl
from jax.experimental.pallas import tpu as pltpu


# --------------------------------------------------------------------------------------
# Kernels
# --------------------------------------------------------------------------------------

def _make_stats_kernel(hw: int, tile: int, ragged: bool):
    """Fused streaming statistics pass (single read of X).

    Per (C, tile) block, accumulate into the resident per-partition output blocks:
        S1 += sum_lanes(x - shift)             (C, 1)
        S2 += (x - shift) @ (x - shift)^T      (C, C)
    The ragged last HW tile (when tile does not divide HW) is lane-masked to zero.
    """

    def kernel(shift_ref, x_ref, s1_ref, s2_ref):
        n = pl.program_id(1)
        j = pl.program_id(2)

        @pl.when((n == 0) & (j == 0))
        def _init():
            s1_ref[...] = jnp.zeros_like(s1_ref)
            s2_ref[...] = jnp.zeros_like(s2_ref)

        xs = x_ref[...].astype(jnp.float32) - shift_ref[...]          # (C, tile)
        if ragged:
            valid = hw - j * tile                                     # traced scalar
            lane = lax.broadcasted_iota(jnp.int32, xs.shape, 1)
            xs = jnp.where(lane < valid, xs, 0.0)

        s1_ref[...] += jnp.sum(xs, axis=-1, keepdims=True)            # (C, 1)
        # NT matmul on the MXU (contract the lane axis of both operands); avoids
        # materializing xs^T.  TODO(synk): confirm via pl.lower_as_mlir that Mosaic does
        # not insert per-block XLU transposes here for very large C.
        s2_ref[...] += lax.dot_general(
            xs, xs,
            dimension_numbers=(((1,), (1,)), ((), ())),
            preferred_element_type=jnp.float32)                       # (C, C)

    return kernel


def _make_ns_kernel(npart: int, M: int, T: int, eps: float):
    """Combine partition partials, build sigma, run Newton-Schulz once -> (mean, wm)."""
    inv_m = 1.0 / float(M)

    def kernel(shift_ref, s1p_ref, s2p_ref, mean_ref, wm_ref):
        s1 = s1p_ref[0]                                               # (C, 1)
        s2 = s2p_ref[0]                                               # (C, C)
        for p in range(1, npart):                                     # npart is tiny/static
            s1 = s1 + s1p_ref[p]
            s2 = s2 + s2p_ref[p]

        d = s1 * inv_m                                                # mean - shift, (C, 1)
        mean_ref[...] = shift_ref[...] + d

        C = wm_ref.shape[0]
        row = lax.broadcasted_iota(jnp.int32, (C, C), 0)
        col = lax.broadcasted_iota(jnp.int32, (C, C), 1)
        eye = (row == col).astype(jnp.float32)

        # Centered covariance from shifted moments: S2/M - d d^T (outer product on MXU).
        ddT = lax.dot_general(d, d, dimension_numbers=(((1,), (1,)), ((), ())),
                              preferred_element_type=jnp.float32)
        sigma = eps * eye + s2 * inv_m - ddT
        rTr = 1.0 / jnp.sum(sigma * eye, keepdims=True)               # 1/trace, (1, 1)
        sigma_n = sigma * rTr

        # Newton-Schulz: P_{k+1} = 1.5 P_k - 0.5 P_k^3 Sigma_N  (tiny CxC, runs once)
        P = eye
        for _ in range(T):
            P2 = jnp.dot(P, P, preferred_element_type=jnp.float32)
            P3 = jnp.dot(P2, P, preferred_element_type=jnp.float32)
            P = 1.5 * P - 0.5 * jnp.dot(P3, sigma_n, preferred_element_type=jnp.float32)

        wm_ref[...] = P * jnp.sqrt(rTr)

    return kernel


def _make_whiten_kernel(use_bf16_matmul: bool):
    """out_tile = wm @ (x_tile - mean) — fully parallel over (sample, HW-tile)."""

    def kernel(wm_ref, mean_ref, x_ref, o_ref):
        x = x_ref[...].astype(jnp.float32)                            # (C, tile)
        xc = x - mean_ref[...]
        if use_bf16_matmul:
            xn = jnp.dot(wm_ref[...].astype(jnp.bfloat16), xc.astype(jnp.bfloat16),
                         preferred_element_type=jnp.float32)
        else:
            xn = jnp.dot(wm_ref[...], xc, preferred_element_type=jnp.float32)
        o_ref[...] = xn.astype(o_ref.dtype)

    return kernel


# --------------------------------------------------------------------------------------
# Wrapper helpers
# --------------------------------------------------------------------------------------

def _vmem_budget():
    """Per-generation (target block bytes, vmem_limit_bytes)."""
    cap = None
    try:
        info = pltpu.get_tpu_info()
        for attr in ("vmem_capacity_bytes", "vmem_size_bytes", "vmem_bytes"):
            v = getattr(info, attr, None)
            if v:
                cap = int(v)
                break
    except Exception:
        cap = None
    if cap is not None and cap > 64 * 1024 * 1024:
        return 8 * 1024 * 1024, 96 * 1024 * 1024      # v5e / v6e: 128 MiB physical VMEM
    return 4 * 1024 * 1024, 48 * 1024 * 1024           # v7x-safe: 64 MiB physical per TC


def _choose_hw_tile(hw: int, c: int, itemsize: int, target_bytes: int) -> int:
    """Lane-aligned (multiple-of-128) HW tile near target_bytes; prefers exact divisors."""
    max_tile = max(128, target_bytes // max(1, c * itemsize))
    max_tile = (max_tile // 128) * 128
    if hw <= max_tile:
        return hw                        # single full-extent tile (always legal)
    t = max_tile
    while t >= 128:
        if hw % t == 0:
            return t                     # exact divisor -> no ragged tile
        t -= 128
    return max_tile                      # ragged last tile (masked / OOB-write-dropped)


# --------------------------------------------------------------------------------------
# Forward
# --------------------------------------------------------------------------------------

def iternorm_single_forward(X, running_mean, running_wm, *,
                            T: int = 5, eps: float = 1e-5, momentum: float = 0.1,
                            training: bool = True, hw_tile: int | None = None):
    """Forward of IterNorm_Single (num_groups = 1, nc = num_features).

    Returns (X_hat, new_running_mean, new_running_wm)."""
    N, C, H, W = X.shape
    HW = H * W
    M = N * HW
    itemsize = jnp.dtype(X.dtype).itemsize

    target_block_bytes, vmem_limit = _vmem_budget()
    tile = hw_tile if hw_tile is not None else _choose_hw_tile(
        HW, C, itemsize, target_block_bytes)
    tile = min(tile, HW)
    n_hw = pl.cdiv(HW, tile)
    ragged = (HW % tile) != 0

    # Free reshape (merges trailing dims, no HBM transpose): (N, C, H, W) -> (N, C, HW)
    x3 = X.reshape(N, C, HW)

    # NOTE: C sits on the sublane axis; C multiples of 8 (f32) / 16 (bf16) give full
    # vreg occupancy.  Smaller C (like the C=4 demo) still works but pads sublanes.

    x_spec = pl.BlockSpec((None, C, tile), lambda n, j: (n, 0, j))
    mean_spec = pl.BlockSpec((C, 1), lambda n, j: (0, 0))
    wm_spec = pl.BlockSpec((C, C), lambda n, j: (0, 0))

    bytes_x = C * M * itemsize
    use_bf16_matmul = jnp.dtype(X.dtype) == jnp.dtype(jnp.bfloat16)

    if training:
        # ---- fused stats pass: per-partition partial S1 / S2 (single read of X) ----
        npart = 2 if (N % 2 == 0) else 1   # leading "parallel" axis -> 2-TC split on v7x
        n_sub = N // npart
        shift = running_mean.astype(jnp.float32).reshape(C, 1)

        stats_x_spec = pl.BlockSpec((None, C, tile),
                                    lambda p, n, j: (p * n_sub + n, 0, j))
        stats_shift_spec = pl.BlockSpec((C, 1), lambda p, n, j: (0, 0))
        s1_spec = pl.BlockSpec((None, C, 1), lambda p, n, j: (p, 0, 0))
        s2_spec = pl.BlockSpec((None, C, C), lambda p, n, j: (p, 0, 0))

        s1p, s2p = pl.pallas_call(
            _make_stats_kernel(HW, tile, ragged),
            out_shape=(jax.ShapeDtypeStruct((npart, C, 1), jnp.float32),
                       jax.ShapeDtypeStruct((npart, C, C), jnp.float32)),
            grid=(npart, n_sub, n_hw),
            in_specs=[stats_shift_spec, stats_x_spec],
            out_specs=[s1_spec, s2_spec],
            compiler_params=pltpu.CompilerParams(
                dimension_semantics=("parallel", "arbitrary", "arbitrary"),
                vmem_limit_bytes=vmem_limit),
            cost_estimate=pl.CostEstimate(
                flops=2 * C * C * M + 2 * C * M, transcendentals=0,
                bytes_accessed=bytes_x + npart * (C * C + C) * 4),
        )(shift, x3)

        # ---- tiny once-only epilogue: combine partials + Newton-Schulz -> mean, wm ----
        mean, wm = pl.pallas_call(
            _make_ns_kernel(npart, M, T, eps),
            out_shape=(jax.ShapeDtypeStruct((C, 1), jnp.float32),
                       jax.ShapeDtypeStruct((C, C), jnp.float32)),
            grid=(1,),
            in_specs=[pl.BlockSpec((C, 1), lambda i: (0, 0)),
                      pl.BlockSpec((npart, C, 1), lambda i: (0, 0, 0)),
                      pl.BlockSpec((npart, C, C), lambda i: (0, 0, 0))],
            out_specs=[pl.BlockSpec((C, 1), lambda i: (0, 0)),
                       pl.BlockSpec((C, C), lambda i: (0, 0))],
            compiler_params=pltpu.CompilerParams(
                dimension_semantics=("arbitrary",), vmem_limit_bytes=vmem_limit),
            cost_estimate=pl.CostEstimate(
                flops=(3 * T + 2) * 2 * C * C * C, transcendentals=1,
                bytes_accessed=(npart + 2) * (C * C + C) * 4),
        )(shift, s1p, s2p)
    else:
        mean = running_mean.astype(jnp.float32).reshape(C, 1)
        wm = running_wm.astype(jnp.float32)

    # ---- whitening pass: out = wm @ (x - mean), fully parallel over (sample, tile) ----
    # TODO(synk): input_output_aliases={2: 0} would donate X's HBM buffer to X_hat (halves
    # peak activation footprint) once callers no longer need X after the call.
    xn3 = pl.pallas_call(
        _make_whiten_kernel(use_bf16_matmul),
        out_shape=jax.ShapeDtypeStruct((N, C, HW), X.dtype),
        grid=(N, n_hw),
        in_specs=[wm_spec, mean_spec, x_spec],
        out_specs=pl.BlockSpec((None, C, tile), lambda n, j: (n, 0, j)),
        compiler_params=pltpu.CompilerParams(
            dimension_semantics=("parallel", "parallel"), vmem_limit_bytes=vmem_limit),
        cost_estimate=pl.CostEstimate(
            flops=2 * C * C * M + C * M, transcendentals=0,
            bytes_accessed=2 * bytes_x + (C * C + C) * 4),
    )(wm, mean, x3)

    X_hat = xn3.reshape(N, C, H, W)   # free reshape back to NCHW

    if training:
        new_running_mean = momentum * mean + (1.0 - momentum) * running_mean
        new_running_wm = momentum * wm + (1.0 - momentum) * running_wm
    else:
        new_running_mean, new_running_wm = running_mean, running_wm
    return X_hat, new_running_mean, new_running_wm


# --------------------------------------------------------------------------------------
# Pure-JAX reference (mirrors the PyTorch autograd.Function training forward)
# --------------------------------------------------------------------------------------

def _reference_forward(X, T=5, eps=1e-5):
    N, C, H, W = X.shape
    M = N * H * W
    x = jnp.transpose(X, (1, 0, 2, 3)).reshape(C, M).astype(jnp.float32)
    mean = jnp.mean(x, axis=-1, keepdims=True)
    xc = x - mean
    eye = jnp.eye(C, dtype=jnp.float32)
    sigma = eps * eye + (1.0 / M) * xc @ xc.T
    rTr = 1.0 / jnp.trace(sigma)
    sigma_n = sigma * rTr
    P = eye
    for _ in range(T):
        P = 1.5 * P - 0.5 * (P @ P @ P) @ sigma_n
    wm = P * jnp.sqrt(rTr)
    xn = wm @ xc
    X_hat = jnp.transpose(xn.reshape(C, N, H, W), (1, 0, 2, 3))
    return X_hat, mean, wm


def _check(X, hw_tile=None, momentum=0.1):
    C = X.shape[1]
    running_mean = jnp.zeros((C, 1), dtype=jnp.float32)
    running_wm = jnp.eye(C, dtype=jnp.float32)
    fwd = jax.jit(functools.partial(
        iternorm_single_forward, T=5, eps=1e-5, momentum=momentum,
        training=True, hw_tile=hw_tile))
    X_hat, new_rm, new_rwm = fwd(X, running_mean, running_wm)
    jax.block_until_ready((X_hat, new_rm, new_rwm))

    X_ref, mean_ref, wm_ref = _reference_forward(X, T=5, eps=1e-5)
    assert X_hat.shape == X.shape
    assert jnp.allclose(X_hat, X_ref, atol=1e-3, rtol=1e-3), "X_hat mismatch vs reference"
    assert jnp.allclose(new_rm, momentum * mean_ref + (1.0 - momentum) * running_mean,
                        atol=1e-4, rtol=1e-4), "running_mean mismatch"
    assert jnp.allclose(new_rwm, momentum * wm_ref + (1.0 - momentum) * running_wm,
                        atol=1e-4, rtol=1e-4), "running_wm mismatch"


if __name__ == "__main__":
    key = jax.random.PRNGKey(0)
    N, C, H, W = 2, 4, 16, 16            # num_features = C = 4

    X = jax.random.normal(key, (N, C, H, W), dtype=jnp.float32) * 2.0 + 0.5
    _check(X)                            # evenly-tiled path (HW = 256)

    # Ragged-tile path: HW = 144 with a forced 128-wide tile -> masked last tile in the
    # stats pass and dropped OOB writes in the whiten pass.
    X2 = jax.random.normal(jax.random.PRNGKey(1), (2, 4, 12, 12), dtype=jnp.float32) - 1.0
    _check(X2, hw_tile=128)

    print("KERNEL_OK")
</pallas_src>

<mosaic_0001>
module attributes {stable_mosaic.version = 11 : i64} {
  func.func @kernel(%arg0: i32, %arg1: memref<4x1xf32, #tpu.memory_space<vmem>>, %arg2: memref<2x4x1xf32, #tpu.memory_space<vmem>>, %arg3: memref<2x4x4xf32, #tpu.memory_space<vmem>>, %arg4: memref<4x1xf32, #tpu.memory_space<vmem>>, %arg5: memref<4x4xf32, #tpu.memory_space<vmem>>) attributes {dimension_semantics = [#tpu.dimension_semantics<arbitrary>], iteration_bounds = array<i64: 1>, scalar_prefetch = 0 : i64, scratch_operands = 0 : i64, tpu.core_type = #tpu.core_type<tc>, window_params = [{pipeline_mode = #tpu.pipeline_mode<synchronous>, transform_indices = @transform_0, window_bounds = array<i64: 4, 1>}, {pipeline_mode = #tpu.pipeline_mode<synchronous>, transform_indices = @transform_1, window_bounds = array<i64: 2, 4, 1>}, {pipeline_mode = #tpu.pipeline_mode<synchronous>, transform_indices = @transform_2, window_bounds = array<i64: 2, 4, 4>}, {pipeline_mode = #tpu.pipeline_mode<synchronous>, transform_indices = @transform_3, window_bounds = array<i64: 4, 1>}, {pipeline_mode = #tpu.pipeline_mode<synchronous>, transform_indices = @transform_4, window_bounds = array<i64: 4, 4>}]} {
    %c0 = arith.constant 0 : index
    %c0_0 = arith.constant 0 : index
    %c0_1 = arith.constant 0 : index
    %0 = vector.load %arg2[%c0, %c0_0, %c0_1] : memref<2x4x1xf32, #tpu.memory_space<vmem>>, vector<1x4x1xf32>
    %1 = vector.shape_cast %0 : vector<1x4x1xf32> to vector<4x1xf32>
    %c0_2 = arith.constant 0 : index
    %c0_3 = arith.constant 0 : index
    %c0_4 = arith.constant 0 : index
    %2 = vector.load %arg3[%c0_2, %c0_3, %c0_4] : memref<2x4x4xf32, #tpu.memory_space<vmem>>, vector<1x4x4xf32>
    %3 = vector.shape_cast %2 : vector<1x4x4xf32> to vector<4x4xf32>
    %c1 = arith.constant 1 : index
    %c0_5 = arith.constant 0 : index
    %c0_6 = arith.constant 0 : index
    %4 = vector.load %arg2[%c1, %c0_5, %c0_6] : memref<2x4x1xf32, #tpu.memory_space<vmem>>, vector<1x4x1xf32>
    %5 = vector.shape_cast %4 : vector<1x4x1xf32> to vector<4x1xf32>
    %6 = arith.addf %1, %5 : vector<4x1xf32>
    %c1_7 = arith.constant 1 : index
    %c0_8 = arith.constant 0 : index
    %c0_9 = arith.constant 0 : index
    %7 = vector.load %arg3[%c1_7, %c0_8, %c0_9] : memref<2x4x4xf32, #tpu.memory_space<vmem>>, vector<1x4x4xf32>
    %8 = vector.shape_cast %7 : vector<1x4x4xf32> to vector<4x4xf32>
    %9 = arith.addf %3, %8 : vector<4x4xf32>
    %cst = arith.constant 0.001953125 : f32
    %10 = vector.broadcast %cst : f32 to vector<4x1xf32>
    %11 = arith.mulf %6, %10 : vector<4x1xf32>
    %c0_10 = arith.constant 0 : index
    %c0_11 = arith.constant 0 : index
    %12 = vector.load %arg1[%c0_10, %c0_11] : memref<4x1xf32, #tpu.memory_space<vmem>>, vector<4x1xf32>
    %13 = arith.addf %12, %11 : vector<4x1xf32>
    %c0_12 = arith.constant 0 : index
    %c0_13 = arith.constant 0 : index
    %14 = vector.load %arg4[%c0_12, %c0_13] : memref<4x1xf32, #tpu.memory_space<vmem>>, vector<4x1xf32>
    tpu.vector_store %arg4[%c0_12, %c0_13], %13 {strides = array<i32>} : memref<4x1xf32, #tpu.memory_space<vmem>>, vector<4x1xf32>,
    %15 = tpu.iota {dimensions = array<i32: 0>} : vector<4x4xi32>
    %16 = tpu.iota {dimensions = array<i32: 1>} : vector<4x4xi32>
    %17 = arith.cmpi eq, %15, %16 : vector<4x4xi32>
    %18 = arith.extui %17 : vector<4x4xi1> to vector<4x4xi32>
    %19 = arith.sitofp %18 : vector<4x4xi32> to vector<4x4xf32>
    %cst_14 = arith.constant dense<0.000000e+00> : vector<4x4xf32>
    %20 = tpu.matmul %11, %11, %cst_14 {dimension_numbers = #tpu.dot_dimension_numbers<[1], [1], [0], [0], [0, 0, 1, 0], [], []>} : vector<4x1xf32>, vector<4x1xf32>, vector<4x4xf32> -> vector<4x4xf32>
    %cst_15 = arith.constant 9.99999974E-6 : f32
    %21 = vector.broadcast %cst_15 : f32 to vector<4x4xf32>
    %22 = arith.mulf %21, %19 : vector<4x4xf32>
    %cst_16 = arith.constant 0.001953125 : f32
    %23 = vector.broadcast %cst_16 : f32 to vector<4x4xf32>
    %24 = arith.mulf %9, %23 : vector<4x4xf32>
    %25 = arith.addf %22, %24 : vector<4x4xf32>
    %26 = arith.subf %25, %20 : vector<4x4xf32>
    %27 = arith.mulf %26, %19 : vector<4x4xf32>
    %28 = vector.shape_cast %27 : vector<4x4xf32> to vector<1x4x4xf32>
    %cst_17 = arith.constant dense<0.000000e+00> : vector<1xf32>
    %29 = vector.multi_reduction <add>, %28, %cst_17 [1, 2] : vector<1x4x4xf32> to vector<1xf32>
    %30 = vector.shape_cast %29 : vector<1xf32> to vector<1x1x1xf32>
    %31 = vector.extract %30[0, 0, 0] : f32 from vector<1x1x1xf32>
    %32 = vector.broadcast %31 : f32 to vector<1x1xf32>
    %cst_18 = arith.constant 1.000000e+00 : f32
    %33 = vector.broadcast %cst_18 : f32 to vector<1x1xf32>
    %34 = arith.divf %33, %32 : vector<1x1xf32>
    %35 = vector.broadcast %34 : vector<1x1xf32> to vector<4x4xf32>
    %36 = arith.mulf %26, %35 : vector<4x4xf32>
    %cst_19 = arith.constant dense<0.000000e+00> : vector<4x4xf32>
    %37 = tpu.matmul %19, %19, %cst_19 {dimension_numbers = #tpu.dot_dimension_numbers<[1], [0], [0], [1], [0, 0, 1, 1], [], []>} : vector<4x4xf32>, vector<4x4xf32>, vector<4x4xf32> -> vector<4x4xf32>
    %cst_20 = arith.constant dense<0.000000e+00> : vector<4x4xf32>
    %38 = tpu.matmul %37, %19, %cst_20 {dimension_numbers = #tpu.dot_dimension_numbers<[1], [0], [0], [1], [0, 0, 1, 1], [], []>} : vector<4x4xf32>, vector<4x4xf32>, vector<4x4xf32> -> vector<4x4xf32>
    %cst_21 = arith.constant 1.500000e+00 : f32
    %39 = vector.broadcast %cst_21 : f32 to vector<4x4xf32>
    %40 = arith.mulf %39, %19 : vector<4x4xf32>
    %cst_22 = arith.constant dense<0.000000e+00> : vector<4x4xf32>
    %41 = tpu.matmul %38, %36, %cst_22 {dimension_numbers = #tpu.dot_dimension_numbers<[1], [0], [0], [1], [0, 0, 1, 1], [], []>} : vector<4x4xf32>, vector<4x4xf32>, vector<4x4xf32> -> vector<4x4xf32>
    %cst_23 = arith.constant 5.000000e-01 : f32
    %42 = vector.broadcast %cst_23 : f32 to vector<4x4xf32>
    %43 = arith.mulf %42, %41 : vector<4x4xf32>
    %44 = arith.subf %40, %43 : vector<4x4xf32>
    %cst_24 = arith.constant dense<0.000000e+00> : vector<4x4xf32>
    %45 = tpu.matmul %44, %44, %cst_24 {dimension_numbers = #tpu.dot_dimension_numbers<[1], [0], [0], [1], [0, 0, 1, 1], [], []>} : vector<4x4xf32>, vector<4x4xf32>, vector<4x4xf32> -> vector<4x4xf32>
    %cst_25 = arith.constant dense<0.000000e+00> : vector<4x4xf32>
    %46 = tpu.matmul %45, %44, %cst_25 {dimension_numbers = #tpu.dot_dimension_numbers<[1], [0], [0], [1], [0, 0, 1, 1], [], []>} : vector<4x4xf32>, vector<4x4xf32>, vector<4x4xf32> -> vector<4x4xf32>
    %cst_26 = arith.constant 1.500000e+00 : f32
    %47 = vector.broadcast %cst_26 : f32 to vector<4x4xf32>
    %48 = arith.mulf %47, %44 : vector<4x4xf32>
    %cst_27 = arith.constant dense<0.000000e+00> : vector<4x4xf32>
    %49 = tpu.matmul %46, %36, %cst_27 {dimension_numbers = #tpu.dot_dimension_numbers<[1], [0], [0], [1], [0, 0, 1, 1], [], []>} : vector<4x4xf32>, vector<4x4xf32>, vector<4x4xf32> -> vector<4x4xf32>
    %cst_28 = arith.constant 5.000000e-01 : f32
    %50 = vector.broadcast %cst_28 : f32 to vector<4x4xf32>
    %51 = arith.mulf %50, %49 : vector<4x4xf32>
    %52 = arith.subf %48, %51 : vector<4x4xf32>
    %cst_29 = arith.constant dense<0.000000e+00> : vector<4x4xf32>
    %53 = tpu.matmul %52, %52, %cst_29 {dimension_numbers = #tpu.dot_dimension_numbers<[1], [0], [0], [1], [0, 0, 1, 1], [], []>} : vector<4x4xf32>, vector<4x4xf32>, vector<4x4xf32> -> vector<4x4xf32>
    %cst_30 = arith.constant dense<0.000000e+00> : vector<4x4xf32>
    %54 = tpu.matmul %53, %52, %cst_30 {dimension_numbers = #tpu.dot_dimension_numbers<[1], [0], [0], [1], [0, 0, 1, 1], [], []>} : vector<4x4xf32>, vector<4x4xf32>, vector<4x4xf32> -> vector<4x4xf32>
    %cst_31 = arith.constant 1.500000e+00 : f32
    %55 = vector.broadcast %cst_31 : f32 to vector<4x4xf32>
    %56 = arith.mulf %55, %52 : vector<4x4xf32>
    %cst_32 = arith.constant dense<0.000000e+00> : vector<4x4xf32>
    %57 = tpu.matmul %54, %36, %cst_32 {dimension_numbers = #tpu.dot_dimension_numbers<[1], [0], [0], [1], [0, 0, 1, 1], [], []>} : vector<4x4xf32>, vector<4x4xf32>, vector<4x4xf32> -> vector<4x4xf32>
    %cst_33 = arith.constant 5.000000e-01 : f32
    %58 = vector.broadcast %cst_33 : f32 to vector<4x4xf32>
    %59 = arith.mulf %58, %57 : vector<4x4xf32>
    %60 = arith.subf %56, %59 : vector<4x4xf32>
    %cst_34 = arith.constant dense<0.000000e+00> : vector<4x4xf32>
    %61 = tpu.matmul %60, %60, %cst_34 {dimension_numbers = #tpu.dot_dimension_numbers<[1], [0], [0], [1], [0, 0, 1, 1], [], []>} : vector<4x4xf32>, vector<4x4xf32>, vector<4x4xf32> -> vector<4x4xf32>
    %cst_35 = arith.constant dense<0.000000e+00> : vector<4x4xf32>
    %62 = tpu.matmul %61, %60, %cst_35 {dimension_numbers = #tpu.dot_dimension_numbers<[1], [0], [0], [1], [0, 0, 1, 1], [], []>} : vector<4x4xf32>, vector<4x4xf32>, vector<4x4xf32> -> vector<4x4xf32>
    %cst_36 = arith.constant 1.500000e+00 : f32
    %63 = vector.broadcast %cst_36 : f32 to vector<4x4xf32>
    %64 = arith.mulf %63, %60 : vector<4x4xf32>
    %cst_37 = arith.constant dense<0.000000e+00> : vector<4x4xf32>
    %65 = tpu.matmul %62, %36, %cst_37 {dimension_numbers = #tpu.dot_dimension_numbers<[1], [0], [0], [1], [0, 0, 1, 1], [], []>} : vector<4x4xf32>, vector<4x4xf32>, vector<4x4xf32> -> vector<4x4xf32>
    %cst_38 = arith.constant 5.000000e-01 : f32
    %66 = vector.broadcast %cst_38 : f32 to vector<4x4xf32>
    %67 = arith.mulf %66, %65 : vector<4x4xf32>
    %68 = arith.subf %64, %67 : vector<4x4xf32>
    %cst_39 = arith.constant dense<0.000000e+00> : vector<4x4xf32>
    %69 = tpu.matmul %68, %68, %cst_39 {dimension_numbers = #tpu.dot_dimension_numbers<[1], [0], [0], [1], [0, 0, 1, 1], [], []>} : vector<4x4xf32>, vector<4x4xf32>, vector<4x4xf32> -> vector<4x4xf32>
    %cst_40 = arith.constant dense<0.000000e+00> : vector<4x4xf32>
    %70 = tpu.matmul %69, %68, %cst_40 {dimension_numbers = #tpu.dot_dimension_numbers<[1], [0], [0], [1], [0, 0, 1, 1], [], []>} : vector<4x4xf32>, vector<4x4xf32>, vector<4x4xf32> -> vector<4x4xf32>
    %cst_41 = arith.constant 1.500000e+00 : f32
    %71 = vector.broadcast %cst_41 : f32 to vector<4x4xf32>
    %72 = arith.mulf %71, %68 : vector<4x4xf32>
    %cst_42 = arith.constant dense<0.000000e+00> : vector<4x4xf32>
    %73 = tpu.matmul %70, %36, %cst_42 {dimension_numbers = #tpu.dot_dimension_numbers<[1], [0], [0], [1], [0, 0, 1, 1], [], []>} : vector<4x4xf32>, vector<4x4xf32>, vector<4x4xf32> -> vector<4x4xf32>
    %cst_43 = arith.constant 5.000000e-01 : f32
    %74 = vector.broadcast %cst_43 : f32 to vector<4x4xf32>
    %75 = arith.mulf %74, %73 : vector<4x4xf32>
    %76 = arith.subf %72, %75 : vector<4x4xf32>
    %77 = math.sqrt %34 : vector<1x1xf32>
    %78 = vector.broadcast %77 : vector<1x1xf32> to vector<4x4xf32>
    %79 = arith.mulf %76, %78 : vector<4x4xf32>
    %c0_44 = arith.constant 0 : index
    %c0_45 = arith.constant 0 : index
    %80 = vector.load %arg5[%c0_44, %c0_45] : memref<4x4xf32, #tpu.memory_space<vmem>>, vector<4x4xf32>
    tpu.vector_store %arg5[%c0_44, %c0_45], %79 {strides = array<i32>} : memref<4x4xf32, #tpu.memory_space<vmem>>, vector<4x4xf32>,
    return
  }
  func.func @transform_0(%arg0: i32) -> (i32, i32) {
    %c0_i32 = arith.constant 0 : i32
    %c0_i32_0 = arith.constant 0 : i32
    %c0_i32_1 = arith.constant 0 : i32
    return %c0_i32, %c0_i32_0 : i32, i32
  }
  func.func @transform_1(%arg0: i32) -> (i32, i32, i32) {
    %c0_i32 = arith.constant 0 : i32
    %c0_i32_0 = arith.constant 0 : i32
    %c0_i32_1 = arith.constant 0 : i32
    %c0_i32_2 = arith.constant 0 : i32
    return %c0_i32, %c0_i32_0, %c0_i32_1 : i32, i32, i32
  }
  func.func @transform_2(%arg0: i32) -> (i32, i32, i32) {
    %c0_i32 = arith.constant 0 : i32
    %c0_i32_0 = arith.constant 0 : i32
    %c0_i32_1 = arith.constant 0 : i32
    %c0_i32_2 = arith.constant 0 : i32
    return %c0_i32, %c0_i32_0, %c0_i32_1 : i32, i32, i32
  }
  func.func @transform_3(%arg0: i32) -> (i32, i32) {
    %c0_i32 = arith.constant 0 : i32
    %c0_i32_0 = arith.constant 0 : i32
    %c0_i32_1 = arith.constant 0 : i32
    return %c0_i32, %c0_i32_0 : i32, i32
  }
  func.func @transform_4(%arg0: i32) -> (i32, i32) {
    %c0_i32 = arith.constant 0 : i32
    %c0_i32_0 = arith.constant 0 : i32
    %c0_i32_1 = arith.constant 0 : i32
    return %c0_i32, %c0_i32_0 : i32, i32
  }
}

module attributes {stable_mosaic.version = 11 : i64} {
  func.func @kernel(%arg0: i32, %arg1: i32, %arg2: i32, %arg3: memref<4x1xf32, #tpu.memory_space<vmem>>, %arg4: memref<1x4x256xf32, #tpu.memory_space<vmem>>, %arg5: memref<1x4x1xf32, #tpu.memory_space<vmem>>, %arg6: memref<1x4x4xf32, #tpu.memory_space<vmem>>) attributes {dimension_semantics = [#tpu.dimension_semantics<parallel>, #tpu.dimension_semantics<arbitrary>, #tpu.dimension_semantics<arbitrary>], iteration_bounds = array<i64: 2, 1, 1>, scalar_prefetch = 0 : i64, scratch_operands = 0 : i64, tpu.core_type = #tpu.core_type<tc>, window_params = [{pipeline_mode = #tpu.pipeline_mode<synchronous>, transform_indices = @transform_0, window_bounds = array<i64: 4, 1>}, {transform_indices = @transform_1, window_bounds = array<i64: 1, 4, 256>}, {transform_indices = @transform_2, window_bounds = array<i64: 1, 4, 1>}, {transform_indices = @transform_3, window_bounds = array<i64: 1, 4, 4>}]} {
    %c0_i32 = arith.constant 0 : i32
    %0 = arith.cmpi eq, %arg1, %c0_i32 : i32
    %c0_i32_0 = arith.constant 0 : i32
    %1 = arith.cmpi eq, %arg2, %c0_i32_0 : i32
    %2 = arith.andi %0, %1 : i1
    %3 = arith.extui %2 : i1 to i32
    %c0_i32_1 = arith.constant 0 : i32
    %4 = arith.cmpi ne, %3, %c0_i32_1 : i32
    scf.if %4 {
      %cst_19 = arith.constant 0.000000e+00 : f32
      %25 = vector.broadcast %cst_19 : f32 to vector<4x1xf32>
      %c0_20 = arith.constant 0 : index
      %c0_21 = arith.constant 0 : index
      %c0_22 = arith.constant 0 : index
      %26 = vector.load %arg5[%c0_20, %c0_21, %c0_22] : memref<1x4x1xf32, #tpu.memory_space<vmem>>, vector<1x4x1xf32>
      %27 = vector.shape_cast %26 : vector<1x4x1xf32> to vector<4x1xf32>
      %28 = vector.shape_cast %25 : vector<4x1xf32> to vector<1x4x1xf32>
      tpu.vector_store %arg5[%c0_20, %c0_21, %c0_22], %28 {strides = array<i32>} : memref<1x4x1xf32, #tpu.memory_space<vmem>>, vector<1x4x1xf32>,
      %cst_23 = arith.constant 0.000000e+00 : f32
      %29 = vector.broadcast %cst_23 : f32 to vector<4x4xf32>
      %c0_24 = arith.constant 0 : index
      %c0_25 = arith.constant 0 : index
      %c0_26 = arith.constant 0 : index
      %30 = vector.load %arg6[%c0_24, %c0_25, %c0_26] : memref<1x4x4xf32, #tpu.memory_space<vmem>>, vector<1x4x4xf32>
      %31 = vector.shape_cast %30 : vector<1x4x4xf32> to vector<4x4xf32>
      %32 = vector.shape_cast %29 : vector<4x4xf32> to vector<1x4x4xf32>
      tpu.vector_store %arg6[%c0_24, %c0_25, %c0_26], %32 {strides = array<i32>} : memref<1x4x4xf32, #tpu.memory_space<vmem>>, vector<1x4x4xf32>,
    } else {
    }
    %c0 = arith.constant 0 : index
    %c0_2 = arith.constant 0 : index
    %c0_3 = arith.constant 0 : index
    %5 = vector.load %arg4[%c0, %c0_2, %c0_3] : memref<1x4x256xf32, #tpu.memory_space<vmem>>, vector<1x4x256xf32>
    %6 = vector.shape_cast %5 : vector<1x4x256xf32> to vector<4x256xf32>
    %c0_4 = arith.constant 0 : index
    %c0_5 = arith.constant 0 : index
    %7 = vector.load %arg3[%c0_4, %c0_5] : memref<4x1xf32, #tpu.memory_space<vmem>>, vector<4x1xf32>
    %8 = vector.broadcast %7 : vector<4x1xf32> to vector<4x256xf32>
    %9 = arith.subf %6, %8 : vector<4x256xf32>
    %c0_6 = arith.constant 0 : index
    %c0_7 = arith.constant 0 : index
    %c0_8 = arith.constant 0 : index
    %10 = vector.load %arg5[%c0_6, %c0_7, %c0_8] : memref<1x4x1xf32, #tpu.memory_space<vmem>>, vector<1x4x1xf32>
    %11 = vector.shape_cast %10 : vector<1x4x1xf32> to vector<4x1xf32>
    %cst = arith.constant dense<0.000000e+00> : vector<4xf32>
    %12 = vector.multi_reduction <add>, %9, %cst [1] : vector<4x256xf32> to vector<4xf32>
    %13 = vector.shape_cast %12 : vector<4xf32> to vector<4x1xf32>
    %14 = arith.addf %11, %13 : vector<4x1xf32>
    %c0_9 = arith.constant 0 : index
    %c0_10 = arith.constant 0 : index
    %c0_11 = arith.constant 0 : index
    %15 = vector.load %arg5[%c0_9, %c0_10, %c0_11] : memref<1x4x1xf32, #tpu.memory_space<vmem>>, vector<1x4x1xf32>
    %16 = vector.shape_cast %15 : vector<1x4x1xf32> to vector<4x1xf32>
    %17 = vector.shape_cast %14 : vector<4x1xf32> to vector<1x4x1xf32>
    tpu.vector_store %arg5[%c0_9, %c0_10, %c0_11], %17 {strides = array<i32>} : memref<1x4x1xf32, #tpu.memory_space<vmem>>, vector<1x4x1xf32>,
    %c0_12 = arith.constant 0 : index
    %c0_13 = arith.constant 0 : index
    %c0_14 = arith.constant 0 : index
    %18 = vector.load %arg6[%c0_12, %c0_13, %c0_14] : memref<1x4x4xf32, #tpu.memory_space<vmem>>, vector<1x4x4xf32>
    %19 = vector.shape_cast %18 : vector<1x4x4xf32> to vector<4x4xf32>
    %cst_15 = arith.constant dense<0.000000e+00> : vector<4x4xf32>
    %20 = tpu.matmul %9, %9, %cst_15 {dimension_numbers = #tpu.dot_dimension_numbers<[1], [1], [0], [0], [0, 0, 1, 0], [], []>} : vector<4x256xf32>, vector<4x256xf32>, vector<4x4xf32> -> vector<4x4xf32>
    %21 = arith.addf %19, %20 : vector<4x4xf32>
    %c0_16 = arith.constant 0 : index
    %c0_17 = arith.constant 0 : index
    %c0_18 = arith.constant 0 : index
    %22 = vector.load %arg6[%c0_16, %c0_17, %c0_18] : memref<1x4x4xf32, #tpu.memory_space<vmem>>, vector<1x4x4xf32>
    %23 = vector.shape_cast %22 : vector<1x4x4xf32> to vector<4x4xf32>
    %24 = vector.shape_cast %21 : vector<4x4xf32> to vector<1x4x4xf32>
    tpu.vector_store %arg6[%c0_16, %c0_17, %c0_18], %24 {strides = array<i32>} : memref<1x4x4xf32, #tpu.memory_space<vmem>>, vector<1x4x4xf32>,
    return
  }
  func.func @transform_0(%arg0: i32, %arg1: i32, %arg2: i32) -> (i32, i32) {
    %c0_i32 = arith.constant 0 : i32
    %c0_i32_0 = arith.constant 0 : i32
    %c0_i32_1 = arith.constant 0 : i32
    return %c0_i32, %c0_i32_0 : i32, i32
  }
  func.func @transform_1(%arg0: i32, %arg1: i32, %arg2: i32) -> (i32, i32, i32) {
    %c1_i32 = arith.constant 1 : i32
    %0 = arith.muli %arg0, %c1_i32 : i32
    %1 = arith.addi %0, %arg1 : i32
    %c0_i32 = arith.constant 0 : i32
    %c0_i32_0 = arith.constant 0 : i32
    return %1, %c0_i32, %arg2 : i32, i32, i32
  }
  func.func @transform_2(%arg0: i32, %arg1: i32, %arg2: i32) -> (i32, i32, i32) {
    %c0_i32 = arith.constant 0 : i32
    %c0_i32_0 = arith.constant 0 : i32
    %c0_i32_1 = arith.constant 0 : i32
    return %arg0, %c0_i32, %c0_i32_0 : i32, i32, i32
  }
  func.func @transform_3(%arg0: i32, %arg1: i32, %arg2: i32) -> (i32, i32, i32) {
    %c0_i32 = arith.constant 0 : i32
    %c0_i32_0 = arith.constant 0 : i32
    %c0_i32_1 = arith.constant 0 : i32
    return %arg0, %c0_i32, %c0_i32_0 : i32, i32, i32
  }
}

module attributes {stable_mosaic.version = 11 : i64} {
  func.func @kernel(%arg0: i32, %arg1: i32, %arg2: memref<4x4xf32, #tpu.memory_space<vmem>>, %arg3: memref<4x1xf32, #tpu.memory_space<vmem>>, %arg4: memref<1x4x256xf32, #tpu.memory_space<vmem>>, %arg5: memref<1x4x256xf32, #tpu.memory_space<vmem>>) attributes {dimension_semantics = [#tpu.dimension_semantics<parallel>, #tpu.dimension_semantics<parallel>], iteration_bounds = array<i64: 2, 1>, scalar_prefetch = 0 : i64, scratch_operands = 0 : i64, tpu.core_type = #tpu.core_type<tc>, window_params = [{pipeline_mode = #tpu.pipeline_mode<synchronous>, transform_indices = @transform_0, window_bounds = array<i64: 4, 4>}, {pipeline_mode = #tpu.pipeline_mode<synchronous>, transform_indices = @transform_1, window_bounds = array<i64: 4, 1>}, {transform_indices = @transform_2, window_bounds = array<i64: 1, 4, 256>}, {transform_indices = @transform_3, window_bounds = array<i64: 1, 4, 256>}]} {
    %c0 = arith.constant 0 : index
    %c0_0 = arith.constant 0 : index
    %c0_1 = arith.constant 0 : index
    %0 = vector.load %arg4[%c0, %c0_0, %c0_1] : memref<1x4x256xf32, #tpu.memory_space<vmem>>, vector<1x4x256xf32>
    %1 = vector.shape_cast %0 : vector<1x4x256xf32> to vector<4x256xf32>
    %c0_2 = arith.constant 0 : index
    %c0_3 = arith.constant 0 : index
    %2 = vector.load %arg3[%c0_2, %c0_3] : memref<4x1xf32, #tpu.memory_space<vmem>>, vector<4x1xf32>
    %3 = vector.broadcast %2 : vector<4x1xf32> to vector<4x256xf32>
    %4 = arith.subf %1, %3 : vector<4x256xf32>
    %c0_4 = arith.constant 0 : index
    %c0_5 = arith.constant 0 : index
    %5 = vector.load %arg2[%c0_4, %c0_5] : memref<4x4xf32, #tpu.memory_space<vmem>>, vector<4x4xf32>
    %cst = arith.constant dense<0.000000e+00> : vector<4x256xf32>
    %6 = tpu.matmul %5, %4, %cst {dimension_numbers = #tpu.dot_dimension_numbers<[1], [0], [0], [1], [0, 0, 1, 1], [], []>} : vector<4x4xf32>, vector<4x256xf32>, vector<4x256xf32> -> vector<4x256xf32>
    %c0_6 = arith.constant 0 : index
    %c0_7 = arith.constant 0 : index
    %c0_8 = arith.constant 0 : index
    %7 = vector.load %arg5[%c0_6, %c0_7, %c0_8] : memref<1x4x256xf32, #tpu.memory_space<vmem>>, vector<1x4x256xf32>
    %8 = vector.shape_cast %7 : vector<1x4x256xf32> to vector<4x256xf32>
    %9 = vector.shape_cast %6 : vector<4x256xf32> to vector<1x4x256xf32>
    tpu.vector_store %arg5[%c0_6, %c0_7, %c0_8], %9 {strides = array<i32>} : memref<1x4x256xf32, #tpu.memory_space<vmem>>, vector<1x4x256xf32>,
    return
  }
  func.func @transform_0(%arg0: i32, %arg1: i32) -> (i32, i32) {
    %c0_i32 = arith.constant 0 : i32
    %c0_i32_0 = arith.constant 0 : i32
    %c0_i32_1 = arith.constant 0 : i32
    return %c0_i32, %c0_i32_0 : i32, i32
  }
  func.func @transform_1(%arg0: i32, %arg1: i32) -> (i32, i32) {
    %c0_i32 = arith.constant 0 : i32
    %c0_i32_0 = arith.constant 0 : i32
    %c0_i32_1 = arith.constant 0 : i32
    return %c0_i32, %c0_i32_0 : i32, i32
  }
  func.func @transform_2(%arg0: i32, %arg1: i32) -> (i32, i32, i32) {
    %c0_i32 = arith.constant 0 : i32
    %c0_i32_0 = arith.constant 0 : i32
    return %arg0, %c0_i32, %arg1 : i32, i32, i32
  }
  func.func @transform_3(%arg0: i32, %arg1: i32) -> (i32, i32, i32) {
    %c0_i32 = arith.constant 0 : i32
    %c0_i32_0 = arith.constant 0 : i32
    return %arg0, %c0_i32, %arg1 : i32, i32, i32
  }
}

</mosaic_0001>

<bundles_post_ra>
// kernel: iternorm_single_forward.3
= control target key start
LH: loop header
LB: loop body
LE: loop exit
PB: predicated region body
PF: predicated region fallthrough
CT: control target
= control target key end

     0   :  { %s502_s12 = smov 0   ;;  %s504_s13 = smov 0   ;;  %s556_s0 = inlined_call_operand.vmem [shape: f32[4,1], index: 0, kind: input, shape index: {}]   ;;  %s557_s1 = inlined_call_operand.vmem [shape: f32[2,4,256], index: 1, kind: input, shape index: {}]   ;;  %s558_s2 = inlined_call_operand.vmem [shape: f32[2,4,1], index: 2, kind: output, shape index: {0}]   ;;  %s559_s3 = inlined_call_operand.vmem [shape: f32[2,4,4], index: 3, kind: output, shape index: {1}]  }
   0x1   :  { %s506_s14 = smov 0  }
   0x2 LB: > { %s33_s15 = sadd.s32 1, %s473_s13  ;;  %p419_p0 = scmp.ge.s32.totalorder %s477_s14, 1  ;;  %s477_s14 = sphi %s506_s14, %s14_s14   ;;  %s473_s13 = sphi %s504_s13, %s561_s13   ;;  %s469_s12 = sphi %s502_s12, %s560_s12  }
   0x3   : > { %p35_p1 = scmp.ge.s32.totalorder %s33_s15, 2  ;;  %p170_p2 = scmp.lt.s32.totalorder %s477_s14, 3 }
   0x5   : > { %s563_s15 = smov (%p35_p1, %s33_s15), 0  ;;  %p171_p3 = pnand %p419_p0, %p170_p2 }
   0x6   : > { %p204_p4 = scmp.lt.s32.totalorder (!%p171_p3), %s469_s12, 1 }
   0x7   : > { %174 = sbr.rel (%p171_p3) target bundleno = 291 (0x123), region = 28 }
   0xc   : > { %v233_v0 = vld [vmem:[%s556_s0] sm:$0xf]  ;;  %v479_v1 = vmov 0   ;;  %s565_s12 = smov (!%p204_p4, %s469_s12), 1  ;;  %v480_v2 = vmov 839922192  }
   0xd   : > { %454 = vset.pattern.permute.xlu0 %v479_v1  ;;  %v239_v3 = vunpack.c.l.s4 %v480_v2  ;;  %s426_s18 = sshll.u32 %s565_s12, 3  ;;  %s422_s19 = sshll.u32 %s565_s12, 2  ;;  %vm228_vm0 = vcmask 3072   ;;  %v481_v8 = vmov 0.0   ;;  %vm251_vm1 = vcmask 1043456  }
   0xe   : > { %236 = vperm.xlu0 %454, %v233_v0   ;;  %s211_s22 = scalar_lea.vmem %s557_s1, %s426_s18  ;;  %s535_s25 = scalar_lea.vmem %s558_s2, %s422_s19  ;;  %vm230_vm2 = vcmask 27648  }
   0xf   : > { %v240_v4 = vunpack.c.0.s8 %v239_v3  ;;  %v232_v6 = vld [vmem:[%s211_s22] sm:$0xff]  ;;  %229 = vst.msk [vmem:[%s535_s25] sm:$0xf] %vm228_vm0, %v481_v8  ;;  %s221_s28 = scalar_lea.vmem %s559_s3, %s422_s19 }
  0x10   : > { %231 = vst.msk [vmem:[%s221_s28] sm:$0xf] %vm230_vm2, %v481_v8 }
  0x16   : > { %v244_v19 = vld [vmem:[%s535_s25] sm:$0xf] }
  0x17   : > { %v260_v23 = vld [vmem:[%s221_s28] sm:$0xf] }
  0x80   : > { %v237_v5 = vpop.permute.xlu0 %236 }
  0x81   : > { %v241_v7 = vperm.slane %v237_v5, %v240_v4 }
  0x83   : > { %v243_v9 = vsub.f32 %v232_v6, %v241_v7 }
  0x85   : > { %246 = vst [vmem:[#allocation1] ss:$2 sm:$0xff] %v243_v9 }
  0x8c   : > { %v247_v10 = vld.sshfl [vmem:[#allocation1] sm:$0xff pattern:$0x75316420]  ;;  %v248_v11 = vld.sshfl [vmem:[#allocation1 + $0x8] sm:$0xff pattern:$0x75316420] }
  0x8d   : > { %v252_v12 = vsel %vm251_vm1, %v247_v10, 0.0  ;;  %v253_v13 = vsel %vm251_vm1, %v248_v11, 0.0  ;;  %261 = vst [vmem:[#allocation1] ss:$2 sm:$0xff] %v243_v9 }
  0x8e   : > { %v254_v14 = vadd.f32 %v253_v13, %v252_v12 }
  0x90   : > { %255 = vadd.xlane.f32.xlu0 %v254_v14 }
  0x94   : > { %v262_v15 = vld.sshfl [vmem:[#allocation1] sm:$0xff pattern:$0x75316420]  ;;  %v263_v16 = vld.sshfl [vmem:[#allocation1 + $0x8] sm:$0xff pattern:$0x75316420] }
  0x95   : > { %266 = vst [vmem:[#allocation1] ss:$2 sm:$0xff] %v243_v9 }
  0x9c   : > { %v267_v17 = vld.sshfl [vmem:[#allocation1] sm:$0xff pattern:$0x75316420]  ;;  %v268_v18 = vld.sshfl [vmem:[#allocation1 + $0x8] sm:$0xff pattern:$0x75316420] }
  0x9d   : > { %286 = vmatpush.xpose.msra.mxu0 %v267_v17  ;;  %306 = vmatpush.xpose.msra.mxu1 %v268_v18 }
  0xa0   : > { %287 = vmatmul.f32.vlgmr.msra.gmra.mxu0 %v262_v15  ;;  %307 = vmatmul.f32.vlgmr.msra.gmra.mxu1 %v263_v16 }
 0x103   : > { %v256_v20 = vpop.xlane.xlu0 %255 }
 0x104   : > { %v257_v21 = vadd.f32 %v256_v20, %v244_v19 }
 0x106   : > { %259 = vst.msk [vmem:[%s535_s25] sm:$0xf] %vm228_vm0, %v257_v21 }
 0x11d   : > { %v288_v22 = vpop.f32.mrf.mxu0  ;;  %v308_v24 = vpop.f32.mrf.mxu1 }
 0x11e   : > { %v309_v25 = vadd.f32 %v308_v24, %v288_v22 }
 0x120   : > { %v311_v26 = vadd.f32 %v309_v25, %v260_v23 }
 0x122   : > { %313 = vst.msk [vmem:[%s221_s28] sm:$0xf] %vm230_vm2, %v311_v26 }
 0x123 PF: > { %s14_s14 = sadd.s32 1, %s477_s14   ;;  %s560_s12 = smov %s473_s13 }
 0x124   : > { %p11_p5 = scmp.ge.s32.totalorder %s14_s14, 4   ;;  %s561_s13 = smov %s563_s15 }
 0x126   :  { %13 = sbr.rel (!%p11_p5) target bundleno = 2 (0x2), region = 74 }

// kernel: iternorm_single_forward.5
= control target key start
LH: loop header
LB: loop body
LE: loop exit
PB: predicated region body
PF: predicated region fallthrough
CT: control target
= control target key end

     0   :  { %s459_s12 = smov 0   ;;  %s461_s13 = smov 0   ;;  %s498_s0 = inlined_call_operand.vmem [shape: f32[4,4], index: 0, kind: input, shape index: {}]   ;;  %s499_s1 = inlined_call_operand.vmem [shape: f32[4,1], index: 1, kind: input, shape index: {}]   ;;  %s500_s2 = inlined_call_operand.vmem [shape: f32[2,4,256], index: 2, kind: input, shape index: {}]   ;;  %s501_s3 = inlined_call_operand.vmem [shape: f32[2,4,256], index: 3, kind: output, shape index: {}]  }
   0x1   :  { %s463_s14 = smov 0  }
   0x2 LB: > { %s25_s15 = sadd.s32 1, %s431_s13  ;;  %p373_p0 = scmp.ge.s32.totalorder %s435_s14, 1  ;;  %s435_s14 = sphi %s463_s14, %s13_s14   ;;  %s431_s13 = sphi %s461_s13, %s503_s13   ;;  %s427_s12 = sphi %s459_s12, %s502_s12  }
   0x3   : > { %p27_p1 = scmp.ge.s32.totalorder %s25_s15, 2  ;;  %p158_p2 = scmp.lt.s32.totalorder %s435_s14, 3 }
   0x5   : > { %s505_s15 = smov (%p27_p1, %s25_s15), 0  ;;  %p159_p3 = pnand %p373_p0, %p158_p2 }
   0x6   : > { %p191_p4 = scmp.lt.s32.totalorder (!%p159_p3), %s427_s12, 1 }
   0x7   : > { %162 = sbr.rel (%p159_p3) target bundleno = 272 (0x110), region = 32 }
   0xc   : > { %v211_v0 = vld [vmem:[%s499_s1] sm:$0xf]  ;;  %v437_v1 = vmov 0   ;;  %s507_s12 = smov (!%p191_p4, %s427_s12), 1  ;;  %v438_v2 = vmov 839922192  }
   0xd   : > { %412 = vset.pattern.permute.xlu0 %v437_v1  ;;  %v217_v3 = vunpack.c.l.s4 %v438_v2  ;;  %s384_s18 = sshll.u32 %s507_s12, 3  ;;  %vm231_vm0 = vcmask 1043456   ;;  %v222_v9 = vld [vmem:[%s498_s0] sm:$0xf]  ;;  %vm227_vm1 = vcmask 31744  }
   0xe   : > { %214 = vperm.xlu0 %412, %v211_v0   ;;  %s198_s21 = scalar_lea.vmem %s500_s2, %s384_s18  ;;  %s208_s26 = scalar_lea.vmem %s501_s3, %s384_s18 }
   0xf   : > { %v218_v4 = vunpack.c.0.s8 %v217_v3  ;;  %v210_v6 = vld [vmem:[%s198_s21] sm:$0xff] }
  0x80   : > { %v215_v5 = vpop.permute.xlu0 %214 }
  0x81   : > { %v219_v7 = vperm.slane %v215_v5, %v218_v4 }
  0x83   : > { %v221_v8 = vsub.f32 %v210_v6, %v219_v7 }
  0x85   : > { %224 = vst [vmem:[#allocation1] ss:$2 sm:$0xff] %v221_v8 }
  0x8c   : > { %v225_v10 = vld.sshfl [vmem:[#allocation1] sm:$0xff pattern:$0x75316420]  ;;  %v226_v11 = vld.sshfl [vmem:[#allocation1 + $0x8] sm:$0xff pattern:$0x75316420] }
  0x8d   : > { %378 = vmatpush.msk.msra.mxu0 %vm231_vm0, %v225_v10  ;;  %380 = vmatpush.msk.msra.mxu1 %vm231_vm0, %v226_v11 }
  0x8e   : > { %381 = vmatmul.msk.f32.vlgmr.msra.gmra.mxu1 %vm227_vm1, %v222_v9  ;;  %379 = vmatmul.msk.f32.vlgmr.msra.gmra.mxu0 %vm227_vm1, %v222_v9 }
 0x10b   : > { %v273_v12 = vpop.f32.mrf.mxu1  ;;  %v253_v13 = vpop.f32.mrf.mxu0 }
 0x10c   : > { %v278_v14 = vrot.slane %v273_v12, 4 }
 0x10e   : > { %v279_v15 = vsel %vm231_vm0, %v253_v13, %v278_v14 }
 0x10f   : > { %281 = vst [vmem:[%s208_s26] sm:$0xff] %v279_v15 }
 0x110 PF: > { %s13_s14 = sadd.s32 1, %s435_s14   ;;  %s502_s12 = smov %s431_s13 }
 0x111   : > { %p10_p5 = scmp.ge.s32.totalorder %s13_s14, 4   ;;  %s503_s13 = smov %s505_s15 }
 0x113   :  { %12 = sbr.rel (!%p10_p5) target bundleno = 2 (0x2), region = 62 }

// kernel: iternorm_single_forward.4
= control target key start
LH: loop header
LB: loop body
LE: loop exit
PB: predicated region body
PF: predicated region fallthrough
CT: control target
= control target key end

     0   :  { %v29_v0 = vlaneseq  ;;  %vm36_vm0 = vcmask 7168   ;;  %vm97_vm1 = vcmask 1043456   ;;  %vm93_vm3 = vcmask 31744   ;;  %s621_s0 = inlined_call_operand.vmem [shape: f32[4,1], index: 0, kind: input, shape index: {}]   ;;  %s622_s1 = inlined_call_operand.vmem [shape: f32[2,4,1], index: 1, kind: input, shape index: {}]   ;;  %s623_s3 = inlined_call_operand.vmem [shape: f32[4,1], index: 3, kind: output, shape index: {0}]   ;;  %s624_s2 = inlined_call_operand.vmem [shape: f32[2,4,4], index: 2, kind: input, shape index: {}]   ;;  %s625_s4 = inlined_call_operand.vmem [shape: f32[4,4], index: 4, kind: output, shape index: {1}]  }
   0x1   :  { %v16_v1 = vld [vmem:[%s622_s1] sm:$0xf]  ;;  %v490_v2 = vld [vmem:[%s622_s1 + $0x4] sm:$0xf]  ;;  %vm27_vm4 = vcmask 3072   ;;  %v532_v8 = vmov 0.0  }
   0x2   :  { %v20_v3 = vadd.f32 %v490_v2, %v16_v1  ;;  %v30_v4 = vshrl.u32 %v29_v0, 7  ;;  %v32_v5 = vand.u32 127, %v29_v0  ;;  %v25_v6 = vld [vmem:[%s621_s0] sm:$0xf]  ;;  %v491_v12 = vld [vmem:[%s624_s2 + $0x4] sm:$0xf] }
   0x3   :  { %v17_v11 = vld [vmem:[%s624_s2] sm:$0xf]  ;;  %vm65_vm5 = vcmask 27648  }
   0x4   :  { %v24_v7 = vmul.f32 0.001953125, %v20_v3  ;;  %vm33_vm2 = vcmp.eq.s32.totalorder %v30_v4, %v32_v5  ;;  %v23_v13 = vadd.f32 %v491_v12, %v17_v11 }
   0x5   :  { %v492_v9 = vsel %vm33_vm2, 1.0, %v532_v8 }
   0x6   :  { %v26_v10 = vadd.f32 %v25_v6, %v24_v7  ;;  %493 = vmatpush.xpose.msk.msra.mxu0 %vm36_vm0, %v24_v7  ;;  %495 = vmatpush.msk.msra.mxu1 %vm97_vm1, %v492_v9  ;;  %v60_v14 = vmul.f32 1e-05, %v492_v9  ;;  %v61_v15 = vmul.f32 0.001953125, %v23_v13  ;;  %v143_v42 = vmul.f32 1.5, %v492_v9 }
   0x7   :  { %496 = vmatmul.msk.f32.vlgmr.msra.gmra.mxu1 %vm93_vm3, %v492_v9  ;;  %497 = vmatpush.msk.msra.mxu2 %vm97_vm1, %v492_v9 }
   0x8   :  { %28 = vst.msk [vmem:[%s623_s3] sm:$0xf] %vm27_vm4, %v26_v10  ;;  %v62_v16 = vadd.f32 %v61_v15, %v60_v14 }
   0x9   :  { %494 = vmatmul.msk.f32.vlgmr.msra.gmra.mxu0 %vm36_vm0, %v24_v7 }
  0x84   :  { %v117_v17 = vpop.f32.mrf.mxu1 }
  0x85   :  { %498 = vmatmul.msk.f32.vlgmr.msra.gmra.mxu2 %vm93_vm3, %v117_v17 }
  0x86   :  { %v57_v18 = vpop.f32.mrf.mxu0 }
  0x87   :  { %v63_v19 = vsub.f32 %v62_v16, %v57_v18 }
  0x89   :  { %v64_v20 = vmul.f32 %v492_v9, %v63_v19 }
  0x8b   :  { %v66_v21 = vsel %vm65_vm5, %v64_v20, 0.0 }
  0x8c   :  { %67 = vadd.xlane.f32.xlu0 %v66_v21 }
  0xff   :  { %v68_v22 = vpop.xlane.xlu0 %67 }
 0x100   :  { %v69_v23 = vrot.slane %v68_v22, 4 }
 0x102   :  { %v70_v24 = vadd.f32 %v69_v23, %v68_v22 }
 0x104   :  { %v71_v25 = vrot.slane %v70_v24, 2 }
 0x106   :  { %v72_v26 = vadd.f32 %v71_v25, %v70_v24 }
 0x108   :  { %v73_v27 = vrot.slane %v72_v26, 1  ;;  %v140_v40 = vpop.f32.mrf.mxu2 }
 0x10a   :  { %v74_v28 = vadd.f32 %v73_v27, %v72_v26 }
 0x10c   :  { %525 = vpush %v74_v28 }
 0x13d   :  { %s526_s2 = spop %525 }
 0x13e   :  { %v76_v29 = vstv %s526_s2 }
 0x13f   :  { %528 = vrcp.f32 %v76_v29  ;;  %v88_v33 = vand.u32 2147483648, %v76_v29  ;;  %v86_v35 = vand.u32 2147483647, %v76_v29  ;;  %vm82_vm7 = vweird.f32 %v76_v29 }
 0x141   :  { %v89_v37 = vor.u32 1.1754944e-38, %v88_v33  ;;  %vm87_vm9 = vcmp.eq.f32.partialorder %v86_v35, 8.507059e+37 }
 0x145   :  { %v529_v30 = vpop.eup %528 }
 0x146   :  { %v78_v31 = vmul.f32 %v529_v30, %v76_v29  ;;  %vm83_vm6 = vweird.f32 %v529_v30 }
 0x147   :  { %vm84_vm8 = vmor %vm82_vm7, %vm83_vm6 }
 0x148   :  { %v79_v32 = vsub.f32 1.0, %v78_v31 }
 0x14a   :  { %v80_v34 = vmul.f32 %v529_v30, %v79_v32 }
 0x14c   :  { %v81_v36 = vadd.f32 %v529_v30, %v80_v34 }
 0x14e   :  { %v85_v38 = vsel %vm84_vm8, %v529_v30, %v81_v36 }
 0x14f   :  { %v581_v39 = vsel %vm87_vm9, %v89_v37, %v85_v38 }
 0x150   :  { %v92_v41 = vmul.f32 %v581_v39, %v63_v19  ;;  %530 = vrsqrt.f32 %v581_v39  ;;  %vm475_vm10 = vcmp.eq.f32.partialorder %v581_v39, inf  ;;  %v478_v13 = vand.u32 2147483648, %v581_v39 }
 0x151   :  { %vm477_vm11 = vcmp.eq.f32.partialorder %v581_v39, 0.0 }
 0x152   :  { %499 = vmatpush.msk.msra.mxu3 %vm97_vm1, %v92_v41 }
 0x153   :  { %500 = vmatmul.msk.f32.vlgmr.msra.gmra.mxu3 %vm93_vm3, %v140_v40 }
 0x154   :  { %505 = vmatpush.msk.msrb.mxu3 %vm97_vm1, %v92_v41 }
 0x156   :  { %v531_v2 = vpop.eup %530 }
 0x157   :  { %v469_v3 = vmul.f32 %v531_v2, %v581_v39 }
 0x159   :  { %v470_v4 = vmul.f32 %v531_v2, %v469_v3 }
 0x15b   :  { %v471_v5 = vmul.f32 0.5, %v470_v4 }
 0x15d   :  { %v472_v6 = vsub.f32 1.5, %v471_v5 }
 0x15f   :  { %v473_v7 = vmul.f32 %v531_v2, %v472_v6 }
 0x161   :  { %v474_v8 = vmul.f32 %v473_v7, %v581_v39 }
 0x163   :  { %v476_v12 = vsel %vm475_vm10, %v581_v39, %v474_v8 }
 0x164   :  { %v479_v15 = vsel %vm477_vm11, %v478_v13, %v476_v12 }
 0x1d6   :  { %v167_v43 = vpop.f32.mrf.mxu3 }
 0x1d7   :  { %v170_v44 = vmul.f32 0.5, %v167_v43 }
 0x1d9   :  { %v171_v45 = vsub.f32 %v143_v42, %v170_v44 }
 0x1db   :  { %501 = vmatpush.msk.msrb.mxu1 %vm97_vm1, %v171_v45  ;;  %503 = vmatpush.msk.msrb.mxu2 %vm97_vm1, %v171_v45  ;;  %v220_v49 = vmul.f32 1.5, %v171_v45 }
 0x1dc   :  { %502 = vmatmul.msk.f32.vlgmr.msrb.gmra.mxu1 %vm93_vm3, %v171_v45 }
 0x1dd   :  { %511 = vmatpush.msk.msra.mxu2 %vm97_vm1, %v92_v41 }
 0x259   :  { %v194_v46 = vpop.f32.mrf.mxu1 }
 0x25a   :  { %504 = vmatmul.msk.f32.vlgmr.msrb.gmra.mxu2 %vm93_vm3, %v194_v46 }
 0x2dd   :  { %v217_v47 = vpop.f32.mrf.mxu2 }
 0x2de   :  { %506 = vmatmul.msk.f32.vlgmr.msrb.gmra.mxu3 %vm93_vm3, %v217_v47 }
 0x361   :  { %v241_v48 = vpop.f32.mrf.mxu3 }
 0x362   :  { %v244_v50 = vmul.f32 0.5, %v241_v48 }
 0x364   :  { %v245_v51 = vsub.f32 %v220_v49, %v244_v50 }
 0x366   :  { %507 = vmatpush.msk.msrb.mxu0 %vm97_vm1, %v245_v51  ;;  %509 = vmatpush.msk.msra.mxu1 %vm97_vm1, %v245_v51  ;;  %v294_v55 = vmul.f32 1.5, %v245_v51 }
 0x367   :  { %508 = vmatmul.msk.f32.vlgmr.msrb.gmra.mxu0 %vm93_vm3, %v245_v51 }
 0x368   :  { %517 = vmatpush.msk.msrb.mxu1 %vm97_vm1, %v92_v41 }
 0x3e4   :  { %v268_v52 = vpop.f32.mrf.mxu0 }
 0x3e5   :  { %510 = vmatmul.msk.f32.vlgmr.msra.gmra.mxu1 %vm93_vm3, %v268_v52 }
 0x462   :  { %v291_v53 = vpop.f32.mrf.mxu1 }
 0x463   :  { %512 = vmatmul.msk.f32.vlgmr.msra.gmra.mxu2 %vm93_vm3, %v291_v53 }
 0x4e6   :  { %v315_v54 = vpop.f32.mrf.mxu2 }
 0x4e7   :  { %v318_v56 = vmul.f32 0.5, %v315_v54 }
 0x4e9   :  { %v319_v57 = vsub.f32 %v294_v55, %v318_v56 }
 0x4eb   :  { %513 = vmatpush.msk.msra.mxu3 %vm97_vm1, %v319_v57  ;;  %515 = vmatpush.msk.msra.mxu0 %vm97_vm1, %v319_v57  ;;  %v368_v61 = vmul.f32 1.5, %v319_v57 }
 0x4ec   :  { %514 = vmatmul.msk.f32.vlgmr.msra.gmra.mxu3 %vm93_vm3, %v319_v57 }
 0x4ed   :  { %523 = vmatpush.msk.msrb.mxu0 %vm97_vm1, %v92_v41 }
 0x56f   :  { %v342_v58 = vpop.f32.mrf.mxu3 }
 0x570   :  { %516 = vmatmul.msk.f32.vlgmr.msra.gmra.mxu0 %vm93_vm3, %v342_v58 }
 0x5ed   :  { %v365_v59 = vpop.f32.mrf.mxu0 }
 0x5ee   :  { %518 = vmatmul.msk.f32.vlgmr.msrb.gmra.mxu1 %vm93_vm3, %v365_v59 }
 0x66b   :  { %v389_v60 = vpop.f32.mrf.mxu1 }
 0x66c   :  { %v392_v62 = vmul.f32 0.5, %v389_v60 }
 0x66e   :  { %v393_v63 = vsub.f32 %v368_v61, %v392_v62 }
 0x670   :  { %519 = vmatpush.msk.msrb.mxu2 %vm97_vm1, %v393_v63  ;;  %521 = vmatpush.msk.msrb.mxu3 %vm97_vm1, %v393_v63  ;;  %v442_v10 = vmul.f32 1.5, %v393_v63 }
 0x671   :  { %520 = vmatmul.msk.f32.vlgmr.msrb.gmra.mxu2 %vm93_vm3, %v393_v63 }
 0x6f4   :  { %v416_v0 = vpop.f32.mrf.mxu2 }
 0x6f5   :  { %522 = vmatmul.msk.f32.vlgmr.msrb.gmra.mxu3 %vm93_vm3, %v416_v0 }
 0x778   :  { %v439_v1 = vpop.f32.mrf.mxu3 }
 0x779   :  { %524 = vmatmul.msk.f32.vlgmr.msrb.gmra.mxu0 %vm93_vm3, %v439_v1 }
 0x7f6   :  { %v463_v9 = vpop.f32.mrf.mxu0 }
 0x7f7   :  { %v466_v11 = vmul.f32 0.5, %v463_v9 }
 0x7f9   :  { %v467_v14 = vsub.f32 %v442_v10, %v466_v11 }
 0x7fb   :  { %v480_v16 = vmul.f32 %v479_v15, %v467_v14 }
 0x7fd   :  { %481 = vst.msk [vmem:[%s625_s4] sm:$0xf] %vm65_vm5, %v480_v16 }

</bundles_post_ra>
